<compile_context>
chip_gen: v7x
topology: tpu7x:2x2x1
jax: 0.10.0
libtpu: 0.0.40
codegen_flags: <defaults>
</compile_context>

<pallas_src>
import jax
import jax.numpy as jnp
from jax.experimental import pallas as pl
from jax.experimental.pallas import tpu as pltpu  # noqa: F401  (TPU backend)


def _ensemble_kernel(x_ref, w1_ref, b1_ref, w2_ref, b2_ref, o_ref):
    """Fused ensemble forward.

    x_ref  : (Cin, N*L)      flattened input, lane-dense
    w1_ref : (M*H, Cin)      all first-layer weights stacked over models
    b1_ref : (M*H, 1)        stacked first-layer biases
    w2_ref : (M, O, H)       second-layer weights, per model
    b2_ref : (M, O, 1)       second-layer biases, per model
    o_ref  : (O, N*L)        ensemble-mean softmax output
    """
    x = x_ref[...]                     # (Cin, NL)
    w1 = w1_ref[...]                   # (MH, Cin)

    c_in = x_ref.shape[0]
    n_models = w2_ref.shape[0]
    hidden = w2_ref.shape[2]

    # ---- Layer 1 on the VPU: Cin (=4) broadcast FMAs, fused bias + ReLU ----
    # (MH,1) * (1,NL) broadcasts to (MH,NL); avoids a K=4 MXU matmul.
    h_pre = w1[:, 0:1] * x[0:1, :]
    for c in range(1, c_in):
        h_pre = h_pre + w1[:, c:c + 1] * x[c:c + 1, :]
    h = jnp.maximum(h_pre + b1_ref[...], 0.0)          # (MH, NL)

    # ---- Layer 2 + softmax per model, accumulate the ensemble mean ----
    out_acc = None
    for m in range(n_models):                           # static unroll, M is tiny
        hm = h[m * hidden:(m + 1) * hidden, :]          # (H, NL), sublane-aligned
        y = jnp.dot(w2_ref[m], hm,
                    preferred_element_type=jnp.float32) + b2_ref[m]   # (O, NL)
        # softmax over the class-channel axis (axis=0 here == dim=1 in NCL)
        y = y - jnp.max(y, axis=0, keepdims=True)
        e = jnp.exp(y)
        # exact reciprocal to keep the 1e-5 reference assert tight
        # (approx=True/EUP vrcp is available if looser tolerance is acceptable)
        p = e * pl.reciprocal(jnp.sum(e, axis=0, keepdims=True), approx=False)
        out_acc = p if out_acc is None else out_acc + p

    o_ref[...] = (out_acc * (1.0 / n_models)).astype(o_ref.dtype)


@jax.jit
def ensemble_forward(x, w1, b1, w2, b2):
    """x: (N, Cin, L); w1: (M, H, Cin); b1: (M, H, 1); w2: (M, O, H); b2: (M, O, 1)."""
    n_models, hidden, c_in = w1.shape
    c_out = w2.shape[1]
    n_batch, _, seq_len = x.shape
    nl = n_batch * seq_len

    # Layout plumbing (outside the kernel; free): flatten batch into lanes,
    # stack the first-layer params over models.
    x_flat = jnp.transpose(x, (1, 0, 2)).reshape(c_in, nl)        # (Cin, N*L)
    w1_s = w1.reshape(n_models * hidden, c_in)                    # (M*H, Cin)
    b1_s = b1.reshape(n_models * hidden, 1)                       # (M*H, 1)

    out_flat = pl.pallas_call(
        _ensemble_kernel,
        out_shape=jax.ShapeDtypeStruct((c_out, nl), jnp.float32),
    )(x_flat, w1_s, b1_s, w2, b2)

    # (O, N*L) -> (N, O, L)
    return jnp.transpose(out_flat.reshape(c_out, n_batch, seq_len), (1, 0, 2))


def _reference_forward(x, w1, b1, w2, b2):
    """Pure-JAX reference mirroring the PyTorch ensemble semantics."""
    outs = []
    for m in range(w1.shape[0]):
        h = jnp.einsum("hc,ncl->nhl", w1[m], x) + b1[m][None]
        h = jnp.maximum(h, 0.0)
        y = jnp.einsum("oh,nhl->nol", w2[m], h) + b2[m][None]
        outs.append(jax.nn.softmax(y, axis=1))
    return jnp.stack(outs).mean(0)


if __name__ == "__main__":
    # Small, deterministic synthetic setup.
    N_MODELS = 3   # ensemble members
    N_BATCH = 2
    C_IN = 4       # one-hot nucleotide channels (SpliceAI input)
    HIDDEN = 32
    C_OUT = 3      # SpliceAI classes: none / acceptor / donor
    SEQ = 128      # lane-dense sequence length

    key = jax.random.PRNGKey(0)
    kx, k1, k2, k3, k4 = jax.random.split(key, 5)

    x = jax.random.normal(kx, (N_BATCH, C_IN, SEQ), dtype=jnp.float32)
    w1 = 0.3 * jax.random.normal(k1, (N_MODELS, HIDDEN, C_IN), dtype=jnp.float32)
    b1 = 0.1 * jax.random.normal(k2, (N_MODELS, HIDDEN, 1), dtype=jnp.float32)
    w2 = 0.3 * jax.random.normal(k3, (N_MODELS, C_OUT, HIDDEN), dtype=jnp.float32)
    b2 = 0.1 * jax.random.normal(k4, (N_MODELS, C_OUT, 1), dtype=jnp.float32)

    out = ensemble_forward(x, w1, b1, w2, b2)
    out = jax.block_until_ready(out)

    ref = _reference_forward(x, w1, b1, w2, b2)
    assert out.shape == (N_BATCH, C_OUT, SEQ), out.shape
    assert jnp.allclose(out, ref, atol=1e-5, rtol=1e-5), float(
        jnp.max(jnp.abs(out - ref))
    )

    print("KERNEL_OK")
</pallas_src>

<mosaic_0001>
module attributes {stable_mosaic.version = 11 : i64} {
  func.func @_ensemble_kernel(%arg0: memref<4x256xf32, #tpu.memory_space<vmem>>, %arg1: memref<96x4xf32, #tpu.memory_space<vmem>>, %arg2: memref<96x1xf32, #tpu.memory_space<vmem>>, %arg3: memref<3x3x32xf32, #tpu.memory_space<vmem>>, %arg4: memref<3x3x1xf32, #tpu.memory_space<vmem>>, %arg5: memref<3x256xf32, #tpu.memory_space<vmem>>) attributes {dimension_semantics = [], scalar_prefetch = 0 : i64, scratch_operands = 0 : i64, tpu.core_type = #tpu.core_type<tc>} {
    %c0 = arith.constant 0 : index
    %c0_0 = arith.constant 0 : index
    %0 = vector.load %arg0[%c0, %c0_0] : memref<4x256xf32, #tpu.memory_space<vmem>>, vector<4x256xf32>
    %c0_1 = arith.constant 0 : index
    %c0_2 = arith.constant 0 : index
    %1 = vector.load %arg1[%c0_1, %c0_2] : memref<96x4xf32, #tpu.memory_space<vmem>>, vector<96x4xf32>
    %2 = vector.extract_strided_slice %1 {offsets = [0, 0], sizes = [96, 1], strides = [1, 1]} : vector<96x4xf32> to vector<96x1xf32>
    %3 = vector.extract_strided_slice %0 {offsets = [0, 0], sizes = [1, 256], strides = [1, 1]} : vector<4x256xf32> to vector<1x256xf32>
    %4 = vector.broadcast %2 : vector<96x1xf32> to vector<96x256xf32>
    %5 = vector.broadcast %3 : vector<1x256xf32> to vector<96x256xf32>
    %6 = arith.mulf %4, %5 : vector<96x256xf32>
    %7 = vector.extract_strided_slice %1 {offsets = [0, 1], sizes = [96, 1], strides = [1, 1]} : vector<96x4xf32> to vector<96x1xf32>
    %8 = vector.extract_strided_slice %0 {offsets = [1, 0], sizes = [1, 256], strides = [1, 1]} : vector<4x256xf32> to vector<1x256xf32>
    %9 = vector.broadcast %7 : vector<96x1xf32> to vector<96x256xf32>
    %10 = vector.broadcast %8 : vector<1x256xf32> to vector<96x256xf32>
    %11 = arith.mulf %9, %10 : vector<96x256xf32>
    %12 = arith.addf %6, %11 : vector<96x256xf32>
    %13 = vector.extract_strided_slice %1 {offsets = [0, 2], sizes = [96, 1], strides = [1, 1]} : vector<96x4xf32> to vector<96x1xf32>
    %14 = vector.extract_strided_slice %0 {offsets = [2, 0], sizes = [1, 256], strides = [1, 1]} : vector<4x256xf32> to vector<1x256xf32>
    %15 = vector.broadcast %13 : vector<96x1xf32> to vector<96x256xf32>
    %16 = vector.broadcast %14 : vector<1x256xf32> to vector<96x256xf32>
    %17 = arith.mulf %15, %16 : vector<96x256xf32>
    %18 = arith.addf %12, %17 : vector<96x256xf32>
    %19 = vector.extract_strided_slice %1 {offsets = [0, 3], sizes = [96, 1], strides = [1, 1]} : vector<96x4xf32> to vector<96x1xf32>
    %20 = vector.extract_strided_slice %0 {offsets = [3, 0], sizes = [1, 256], strides = [1, 1]} : vector<4x256xf32> to vector<1x256xf32>
    %21 = vector.broadcast %19 : vector<96x1xf32> to vector<96x256xf32>
    %22 = vector.broadcast %20 : vector<1x256xf32> to vector<96x256xf32>
    %23 = arith.mulf %21, %22 : vector<96x256xf32>
    %24 = arith.addf %18, %23 : vector<96x256xf32>
    %c0_3 = arith.constant 0 : index
    %c0_4 = arith.constant 0 : index
    %25 = vector.load %arg2[%c0_3, %c0_4] : memref<96x1xf32, #tpu.memory_space<vmem>>, vector<96x1xf32>
    %26 = vector.broadcast %25 : vector<96x1xf32> to vector<96x256xf32>
    %27 = arith.addf %24, %26 : vector<96x256xf32>
    %cst = arith.constant 0.000000e+00 : f32
    %28 = vector.broadcast %cst : f32 to vector<96x256xf32>
    %29 = arith.maximumf %27, %28 : vector<96x256xf32>
    %30 = vector.extract_strided_slice %29 {offsets = [0, 0], sizes = [32, 256], strides = [1, 1]} : vector<96x256xf32> to vector<32x256xf32>
    %c0_5 = arith.constant 0 : index
    %c0_6 = arith.constant 0 : index
    %c0_7 = arith.constant 0 : index
    %31 = vector.load %arg3[%c0_5, %c0_6, %c0_7] : memref<3x3x32xf32, #tpu.memory_space<vmem>>, vector<1x3x32xf32>
    %32 = vector.shape_cast %31 : vector<1x3x32xf32> to vector<3x32xf32>
    %cst_8 = arith.constant dense<0.000000e+00> : vector<3x256xf32>
    %33 = tpu.matmul %32, %30, %cst_8 {dimension_numbers = #tpu.dot_dimension_numbers<[1], [0], [0], [1], [0, 0, 1, 1], [], []>} : vector<3x32xf32>, vector<32x256xf32>, vector<3x256xf32> -> vector<3x256xf32>
    %c0_9 = arith.constant 0 : index
    %c0_10 = arith.constant 0 : index
    %c0_11 = arith.constant 0 : index
    %34 = vector.load %arg4[%c0_9, %c0_10, %c0_11] : memref<3x3x1xf32, #tpu.memory_space<vmem>>, vector<1x3x1xf32>
    %35 = vector.shape_cast %34 : vector<1x3x1xf32> to vector<3x1xf32>
    %36 = vector.broadcast %35 : vector<3x1xf32> to vector<3x256xf32>
    %37 = arith.addf %33, %36 : vector<3x256xf32>
    %cst_12 = arith.constant dense<0xFF800000> : vector<256xf32>
    %38 = vector.multi_reduction <maximumf>, %37, %cst_12 [0] : vector<3x256xf32> to vector<256xf32>
    %39 = vector.shape_cast %38 : vector<256xf32> to vector<1x256xf32>
    %40 = vector.broadcast %39 : vector<1x256xf32> to vector<3x256xf32>
    %41 = arith.subf %37, %40 : vector<3x256xf32>
    %42 = math.exp %41 : vector<3x256xf32>
    %cst_13 = arith.constant dense<0.000000e+00> : vector<256xf32>
    %43 = vector.multi_reduction <add>, %42, %cst_13 [0] : vector<3x256xf32> to vector<256xf32>
    %44 = vector.shape_cast %43 : vector<256xf32> to vector<1x256xf32>
    %45 = tpu.reciprocal %44 : vector<1x256xf32> -> vector<1x256xf32>
    %46 = vector.broadcast %45 : vector<1x256xf32> to vector<3x256xf32>
    %47 = arith.mulf %42, %46 : vector<3x256xf32>
    %48 = vector.extract_strided_slice %29 {offsets = [32, 0], sizes = [32, 256], strides = [1, 1]} : vector<96x256xf32> to vector<32x256xf32>
    %c1 = arith.constant 1 : index
    %c0_14 = arith.constant 0 : index
    %c0_15 = arith.constant 0 : index
    %49 = vector.load %arg3[%c1, %c0_14, %c0_15] : memref<3x3x32xf32, #tpu.memory_space<vmem>>, vector<1x3x32xf32>
    %50 = vector.shape_cast %49 : vector<1x3x32xf32> to vector<3x32xf32>
    %cst_16 = arith.constant dense<0.000000e+00> : vector<3x256xf32>
    %51 = tpu.matmul %50, %48, %cst_16 {dimension_numbers = #tpu.dot_dimension_numbers<[1], [0], [0], [1], [0, 0, 1, 1], [], []>} : vector<3x32xf32>, vector<32x256xf32>, vector<3x256xf32> -> vector<3x256xf32>
    %c1_17 = arith.constant 1 : index
    %c0_18 = arith.constant 0 : index
    %c0_19 = arith.constant 0 : index
    %52 = vector.load %arg4[%c1_17, %c0_18, %c0_19] : memref<3x3x1xf32, #tpu.memory_space<vmem>>, vector<1x3x1xf32>
    %53 = vector.shape_cast %52 : vector<1x3x1xf32> to vector<3x1xf32>
    %54 = vector.broadcast %53 : vector<3x1xf32> to vector<3x256xf32>
    %55 = arith.addf %51, %54 : vector<3x256xf32>
    %cst_20 = arith.constant dense<0xFF800000> : vector<256xf32>
    %56 = vector.multi_reduction <maximumf>, %55, %cst_20 [0] : vector<3x256xf32> to vector<256xf32>
    %57 = vector.shape_cast %56 : vector<256xf32> to vector<1x256xf32>
    %58 = vector.broadcast %57 : vector<1x256xf32> to vector<3x256xf32>
    %59 = arith.subf %55, %58 : vector<3x256xf32>
    %60 = math.exp %59 : vector<3x256xf32>
    %cst_21 = arith.constant dense<0.000000e+00> : vector<256xf32>
    %61 = vector.multi_reduction <add>, %60, %cst_21 [0] : vector<3x256xf32> to vector<256xf32>
    %62 = vector.shape_cast %61 : vector<256xf32> to vector<1x256xf32>
    %63 = tpu.reciprocal %62 : vector<1x256xf32> -> vector<1x256xf32>
    %64 = vector.broadcast %63 : vector<1x256xf32> to vector<3x256xf32>
    %65 = arith.mulf %60, %64 : vector<3x256xf32>
    %66 = arith.addf %47, %65 : vector<3x256xf32>
    %67 = vector.extract_strided_slice %29 {offsets = [64, 0], sizes = [32, 256], strides = [1, 1]} : vector<96x256xf32> to vector<32x256xf32>
    %c2 = arith.constant 2 : index
    %c0_22 = arith.constant 0 : index
    %c0_23 = arith.constant 0 : index
    %68 = vector.load %arg3[%c2, %c0_22, %c0_23] : memref<3x3x32xf32, #tpu.memory_space<vmem>>, vector<1x3x32xf32>
    %69 = vector.shape_cast %68 : vector<1x3x32xf32> to vector<3x32xf32>
    %cst_24 = arith.constant dense<0.000000e+00> : vector<3x256xf32>
    %70 = tpu.matmul %69, %67, %cst_24 {dimension_numbers = #tpu.dot_dimension_numbers<[1], [0], [0], [1], [0, 0, 1, 1], [], []>} : vector<3x32xf32>, vector<32x256xf32>, vector<3x256xf32> -> vector<3x256xf32>
    %c2_25 = arith.constant 2 : index
    %c0_26 = arith.constant 0 : index
    %c0_27 = arith.constant 0 : index
    %71 = vector.load %arg4[%c2_25, %c0_26, %c0_27] : memref<3x3x1xf32, #tpu.memory_space<vmem>>, vector<1x3x1xf32>
    %72 = vector.shape_cast %71 : vector<1x3x1xf32> to vector<3x1xf32>
    %73 = vector.broadcast %72 : vector<3x1xf32> to vector<3x256xf32>
    %74 = arith.addf %70, %73 : vector<3x256xf32>
    %cst_28 = arith.constant dense<0xFF800000> : vector<256xf32>
    %75 = vector.multi_reduction <maximumf>, %74, %cst_28 [0] : vector<3x256xf32> to vector<256xf32>
    %76 = vector.shape_cast %75 : vector<256xf32> to vector<1x256xf32>
    %77 = vector.broadcast %76 : vector<1x256xf32> to vector<3x256xf32>
    %78 = arith.subf %74, %77 : vector<3x256xf32>
    %79 = math.exp %78 : vector<3x256xf32>
    %cst_29 = arith.constant dense<0.000000e+00> : vector<256xf32>
    %80 = vector.multi_reduction <add>, %79, %cst_29 [0] : vector<3x256xf32> to vector<256xf32>
    %81 = vector.shape_cast %80 : vector<256xf32> to vector<1x256xf32>
    %82 = tpu.reciprocal %81 : vector<1x256xf32> -> vector<1x256xf32>
    %83 = vector.broadcast %82 : vector<1x256xf32> to vector<3x256xf32>
    %84 = arith.mulf %79, %83 : vector<3x256xf32>
    %85 = arith.addf %66, %84 : vector<3x256xf32>
    %cst_30 = arith.constant 0.333333343 : f32
    %86 = vector.broadcast %cst_30 : f32 to vector<3x256xf32>
    %87 = arith.mulf %85, %86 : vector<3x256xf32>
    %c0_31 = arith.constant 0 : index
    %c0_32 = arith.constant 0 : index
    %88 = vector.load %arg5[%c0_31, %c0_32] : memref<3x256xf32, #tpu.memory_space<vmem>>, vector<3x256xf32>
    tpu.vector_store %arg5[%c0_31, %c0_32], %87 {strides = array<i32>} : memref<3x256xf32, #tpu.memory_space<vmem>>, vector<3x256xf32>,
    return
  }
}

</mosaic_0001>

<bundles_post_ra>
// kernel: ensemble_forward.1
= control target key start
LH: loop header
LB: loop body
LE: loop exit
PB: predicated region body
PF: predicated region fallthrough
CT: control target
= control target key end

     0   :  { %v1066_v0 = vmov 1   ;;  %v1067_v4 = vmov 2   ;;  %v1068_v7 = vmov 0   ;;  %v1069_v11 = vmov 3   ;;  %s1527_s1 = inlined_call_operand.vmem [shape: f32[96,4], index: 1, kind: input, shape index: {}]   ;;  %s1528_s2 = inlined_call_operand.vmem [shape: f32[96,1], index: 2, kind: input, shape index: {}]   ;;  %s1529_s4 = inlined_call_operand.vmem [shape: f32[3,3,1], index: 4, kind: input, shape index: {}]   ;;  %s1530_s0 = inlined_call_operand.vmem [shape: f32[4,256], index: 0, kind: input, shape index: {}]   ;;  %s1531_s3 = inlined_call_operand.vmem [shape: f32[3,3,32], index: 3, kind: input, shape index: {}]   ;;  %s1532_s5 = inlined_call_operand.vmem [shape: f32[3,256], index: 5, kind: output, shape index: {}]  }
   0x1   :  { %1026 = vset.pattern.permute.xlu0 %v1066_v0  ;;  %1012 = vset.pattern.permute.xlu1 %v1066_v0  ;;  %v1106_v1 = vld [vmem:[%s1527_s1 + $0x38] sm:$0xff]  ;;  %v21_v2 = vld [vmem:[%s1527_s1] sm:$0xff]  ;;  %v22_v3 = vld [vmem:[%s1527_s1 + $0x8] sm:$0xff]  ;;  %v94_v24 = vlaneseq  ;;  %v1070_v52 = vmov 0.0   ;;  %vm605_vm0 = vcmask 261120   ;;  %vm680_vm1 = vcmask 1042432  }
   0x2   :  { %165 = vperm.xlu0 %1026, %v1106_v1   ;;  %137 = vperm.xlu1 %1012, %v21_v2   ;;  %v23_v5 = vld [vmem:[%s1527_s1 + $0x10] sm:$0xff]  ;;  %v25_v6 = vld [vmem:[%s1527_s1 + $0x20] sm:$0xff]  ;;  %v24_v10 = vld [vmem:[%s1527_s1 + $0x18] sm:$0xff] }
   0x3   :  { %v1127_v8 = vld [vmem:[%s1527_s1 + $0x30] sm:$0xff]  ;;  %v30_v12 = vld [vmem:[%s1527_s1 + $0x48] sm:$0xff]  ;;  %v29_v14 = vld [vmem:[%s1527_s1 + $0x40] sm:$0xff]  ;;  %v1212_v28 = vshrl.u32 %v94_v24, 7  ;;  %673 = vmatprep.mubr.f32.mxu0 %v1070_v52  ;;  %795 = vmatprep.mubr.f32.mxu1 %v1070_v52 }
   0x4   :  { %v1134_v9 = vld [vmem:[%s1527_s1 + $0x50] sm:$0xff]  ;;  %v26_v13 = vld [vmem:[%s1527_s1 + $0x28] sm:$0xff]  ;;  %v1165_v15 = vld [vmem:[%s1527_s1 + $0x58] sm:$0xff] }
   0x5   :  { %v478_v16 = vld [vmem:[%s1528_s2] sm:$0xff]  ;;  %v479_v18 = vld [vmem:[%s1528_s2 + $0x8] sm:$0xff]  ;;  %v485_v19 = vld [vmem:[%s1528_s2 + $0x38] sm:$0xff]  ;;  %v96_v30 = vsub.s32 0, %v1212_v28  ;;  %v100_v31 = vsub.s32 4, %v1212_v28  ;;  %v300_v32 = vsub.s32 2, %v1212_v28 }
   0x6   :  { %1027 = vset.pattern.permute.xlu0 %v1067_v4  ;;  %141 = vperm.xlu1 %1012, %v22_v3   ;;  %v486_v17 = vld [vmem:[%s1528_s2 + $0x40] sm:$0xff]  ;;  %v489_v20 = vld [vmem:[%s1528_s2 + $0x58] sm:$0xff]  ;;  %v480_v25 = vld [vmem:[%s1528_s2 + $0x10] sm:$0xff]  ;;  %v304_v33 = vsub.s32 6, %v1212_v28  ;;  %v186_v36 = vsub.s32 1, %v1212_v28  ;;  %v190_v37 = vsub.s32 5, %v1212_v28 }
   0x7   :  { %251 = vperm.xlu0 %1027, %v21_v2   ;;  %v978_v21 = vld [vmem:[%s1529_s4 + $0x4] sm:$0x7]  ;;  %v481_v29 = vld [vmem:[%s1528_s2 + $0x18] sm:$0xff] }
   0x8   :  { %v1228_v38 = vld [vmem:[%s1530_s0] sm:$0xff] }
   0x9   :  { %v97_v39 = vrot.slane %v1228_v38, %v96_v30  ;;  %v101_v40 = vrot.slane %v1228_v38, %v100_v31  ;;  %v301_v41 = vrot.slane %v1228_v38, %v300_v32  ;;  %v305_v42 = vrot.slane %v1228_v38, %v304_v33  ;;  %v482_v63 = vld [vmem:[%s1528_s2 + $0x20] sm:$0xff] }
   0xa   :  { %1013 = vset.pattern.permute.xlu1 %v1067_v4  ;;  %v187_v44 = vrot.slane %v1228_v38, %v186_v36  ;;  %v191_v45 = vrot.slane %v1228_v38, %v190_v37 }
   0xb   :  { %259 = vperm.xlu0 %1027, %v23_v5   ;;  %255 = vperm.xlu1 %1013, %v22_v3   ;;  %v1238_v47 = vrot.slane %v97_v39, %v96_v30  ;;  %v1240_v48 = vrot.slane %v101_v40, %v96_v30  ;;  %v1242_v49 = vrot.slane %v301_v41, %v300_v32 }
   0xc   :  { %v1244_v50 = vrot.slane %v305_v42, %v300_v32  ;;  %v1250_v53 = vrot.slane %v187_v44, %v186_v36  ;;  %v1252_v54 = vrot.slane %v191_v45, %v186_v36  ;;  %v599_v45 = vld [vmem:[%s1529_s4] sm:$0x7] }
   0xf   :  { %267 = vperm.xlu0 %1027, %v25_v6   ;;  %1014 = vset.pattern.permute.xlu1 %v1068_v7 }
  0x10   :  { %45 = vperm.xlu1 %1014, %v23_v5  }
  0x13   :  { %275 = vperm.xlu0 %1027, %v1127_v8  }
  0x14   :  { %1015 = vset.pattern.permute.xlu1 %v1066_v0 }
  0x15   :  { %145 = vperm.xlu1 %1015, %v23_v5  }
  0x17   :  { %291 = vperm.xlu0 %1027, %v1134_v9  }
  0x19   :  { %149 = vperm.xlu1 %1015, %v24_v10  }
  0x1b   :  { %1035 = vset.pattern.permute.xlu0 %v1069_v11 }
  0x1c   :  { %365 = vperm.xlu0 %1035, %v21_v2  }
  0x1d   :  { %1016 = vset.pattern.permute.xlu1 %v1069_v11 }
  0x1e   :  { %369 = vperm.xlu1 %1016, %v22_v3  }
  0x20   :  { %377 = vperm.xlu0 %1035, %v24_v10  }
  0x22   :  { %1017 = vset.pattern.permute.xlu1 %v1068_v7 }
  0x23   :  { %55 = vperm.xlu1 %1017, %v25_v6  }
  0x24   :  { %381 = vperm.xlu0 %1035, %v25_v6  }
  0x27   :  { %1018 = vset.pattern.permute.xlu1 %v1066_v0 }
  0x28   :  { %401 = vperm.xlu0 %1035, %v30_v12   ;;  %153 = vperm.xlu1 %1018, %v25_v6  }
  0x2c   :  { %393 = vperm.xlu0 %1035, %v1106_v1   ;;  %157 = vperm.xlu1 %1018, %v26_v13  }
  0x30   :  { %405 = vperm.xlu0 %1035, %v1134_v9   ;;  %1019 = vset.pattern.permute.xlu1 %v1067_v4 }
  0x31   :  { %263 = vperm.xlu1 %1019, %v24_v10  }
  0x34   :  { %1039 = vset.pattern.permute.xlu0 %v1068_v7 }
  0x35   :  { %35 = vperm.xlu0 %1039, %v21_v2   ;;  %1020 = vset.pattern.permute.xlu1 %v1068_v7 }
  0x36   :  { %75 = vperm.xlu1 %1020, %v29_v14  }
  0x39   :  { %40 = vperm.xlu0 %1039, %v22_v3  }
  0x3a   :  { %1021 = vset.pattern.permute.xlu1 %v1066_v0 }
  0x3b   :  { %169 = vperm.xlu1 %1021, %v29_v14  }
  0x3d   :  { %50 = vperm.xlu0 %1039, %v24_v10   ;;  %v414_v10 = vsub.s32 3, %v1212_v28 }
  0x3f   :  { %173 = vperm.xlu1 %1021, %v30_v12  }
  0x41   :  { %60 = vperm.xlu0 %1039, %v26_v13  }
  0x43   :  { %1022 = vset.pattern.permute.xlu1 %v1067_v4 }
  0x44   :  { %271 = vperm.xlu1 %1022, %v26_v13  }
  0x45   :  { %80 = vperm.xlu0 %1039, %v30_v12  }
  0x48   :  { %1023 = vset.pattern.permute.xlu1 %v1069_v11 }
  0x49   :  { %373 = vperm.xlu1 %1023, %v23_v5   ;;  %65 = vperm.xlu0 %1039, %v1127_v8   ;;  %v483_v5 = vld [vmem:[%s1528_s2 + $0x28] sm:$0xff] }
  0x4d   :  { %1024 = vset.pattern.permute.xlu1 %v1068_v7  ;;  %90 = vperm.xlu0 %1039, %v1165_v15  }
  0x4e   :  { %492 = vperm.xlu1 %1024, %v478_v16   ;;  %v487_v16 = vld [vmem:[%s1528_s2 + $0x48] sm:$0xff] }
  0x51   :  { %532 = vperm.xlu0 %1039, %v486_v17   ;;  %v415_v17 = vrot.slane %v1228_v38, %v414_v10 }
  0x52   :  { %497 = vperm.xlu1 %1024, %v479_v18  }
  0x55   :  { %527 = vperm.xlu0 %1039, %v485_v19  }
  0x56   :  { %70 = vperm.xlu1 %1024, %v1106_v1  }
  0x59   :  { %547 = vperm.xlu0 %1039, %v489_v20  }
  0x5a   :  { %1025 = vset.pattern.permute.xlu1 %v1066_v0 }
  0x5b   :  { %161 = vperm.xlu1 %1025, %v1127_v8  }
  0x5d   :  { %725 = vperm.xlu0 %1039, %v978_v21  }
  0x5f   :  { %1028 = vset.pattern.permute.xlu1 %v1067_v4 }
  0x60   :  { %283 = vperm.xlu1 %1028, %v29_v14  }
  0x64   :  { %287 = vperm.xlu1 %1028, %v30_v12   ;;  %v418_v12 = vsub.s32 7, %v1212_v28 }
  0x66   :  { %v419_v18 = vrot.slane %v1228_v38, %v418_v12  ;;  %v488_v38 = vld [vmem:[%s1528_s2 + $0x50] sm:$0xff] }
  0x68   :  { %1029 = vset.pattern.permute.xlu1 %v1069_v11  ;;  %v1302_v30 = vrot.slane %v419_v18, %v414_v10 }
  0x69   :  { %385 = vperm.xlu1 %1029, %v26_v13  }
  0x6d   :  { %1030 = vset.pattern.permute.xlu1 %v1068_v7 }
  0x6e   :  { %85 = vperm.xlu1 %1030, %v1134_v9  }
  0x72   :  { %1031 = vset.pattern.permute.xlu1 %v1066_v0 }
  0x73   :  { %177 = vperm.xlu1 %1031, %v1134_v9  }
  0x77   :  { %181 = vperm.xlu1 %1031, %v1165_v15  }
  0x7b   :  { %1032 = vset.pattern.permute.xlu1 %v1067_v4 }
  0x7c   :  { %279 = vperm.xlu1 %1032, %v1106_v1  }
  0x80   :  { %1033 = vset.pattern.permute.xlu1 %v1069_v11 }
  0x81   :  { %397 = vperm.xlu1 %1033, %v29_v14   ;;  %v1200_v22 = vpop.permute.xlu1 %137  ;;  %v1202_v23 = vpop.permute.xlu0 %165 }
  0x85   :  { %1034 = vset.pattern.permute.xlu1 %v1068_v7  ;;  %v1208_v26 = vpop.permute.xlu1 %141 }
  0x86   :  { %502 = vperm.xlu1 %1034, %v480_v25   ;;  %v1210_v27 = vpop.permute.xlu0 %251  ;;  %v484_v25 = vld [vmem:[%s1528_s2 + $0x30] sm:$0xff] }
  0x8a   :  { %507 = vperm.xlu1 %1034, %v481_v29   ;;  %v1221_v34 = vpop.permute.xlu1 %255  ;;  %v260_v35 = vpop.permute.xlu0 %259  ;;  %v1300_v29 = vrot.slane %v415_v17, %v414_v10 }
  0x8b   :  { %v320_v55 = vmul.f32 %v1242_v49, %v260_v35  ;;  %v321_v56 = vmul.f32 %v1244_v50, %v260_v35 }
  0x8e   :  { %1036 = vset.pattern.permute.xlu1 %v1067_v4  ;;  %v268_v43 = vpop.permute.xlu0 %267 }
  0x8f   :  { %295 = vperm.xlu1 %1036, %v1165_v15   ;;  %v46_v46 = vpop.permute.xlu1 %45  ;;  %v324_v28 = vmul.f32 %v1242_v49, %v268_v43 }
  0x90   :  { %v116_v58 = vmul.f32 %v1238_v47, %v46_v46  ;;  %v117_v59 = vmul.f32 %v1240_v48, %v46_v46 }
  0x92   :  { %v1246_v51 = vpop.permute.xlu0 %275 }
  0x93   :  { %1037 = vset.pattern.permute.xlu1 %v1069_v11 }
  0x94   :  { %389 = vperm.xlu1 %1037, %v1127_v8   ;;  %v146_v57 = vpop.permute.xlu1 %145 }
  0x95   :  { %v206_v60 = vmul.f32 %v1250_v53, %v146_v57  ;;  %v207_v61 = vmul.f32 %v1252_v54, %v146_v57 }
  0x96   :  { %v1262_v62 = vpop.permute.xlu0 %291 }
  0x97   :  { %v230_v0 = vadd.f32 %v206_v60, %v116_v58  ;;  %v231_v1 = vadd.f32 %v207_v61, %v117_v59 }
  0x98   :  { %1038 = vset.pattern.permute.xlu1 %v1068_v7  ;;  %v150_v2 = vpop.permute.xlu1 %149 }
  0x99   :  { %512 = vperm.xlu1 %1038, %v482_v63   ;;  %v1268_v3 = vadd.f32 %v320_v55, %v230_v0  ;;  %v1270_v4 = vadd.f32 %v321_v56, %v231_v1  ;;  %v981_v55 = vld [vmem:[%s1529_s4 + $0x8] sm:$0x7]  ;;  %v208_v0 = vmul.f32 %v1250_v53, %v150_v2  ;;  %v209_v1 = vmul.f32 %v1252_v54, %v150_v2 }
  0x9b   :  { %v1275_v6 = vpop.permute.xlu0 %365 }
  0x9d   :  { %517 = vperm.xlu1 %1038, %v483_v5   ;;  %v1277_v8 = vpop.permute.xlu1 %369 }
  0x9f   :  { %v378_v9 = vpop.permute.xlu0 %377 }
  0xa0   :  { %v437_v17 = vmul.f32 %v1302_v30, %v378_v9 }
  0xa1   :  { %1040 = vset.pattern.permute.xlu1 %v1069_v11 }
  0xa2   :  { %409 = vperm.xlu1 %1040, %v1165_v15   ;;  %v56_v13 = vpop.permute.xlu1 %55 }
  0xa3   :  { %v382_v14 = vpop.permute.xlu0 %381  ;;  %v120_v11 = vmul.f32 %v1238_v47, %v56_v13  ;;  %v121_v15 = vmul.f32 %v1240_v48, %v56_v13 }
  0xa4   :  { %v438_v33 = vmul.f32 %v1300_v29, %v382_v14  ;;  %v439_v35 = vmul.f32 %v1302_v30, %v382_v14 }
  0xa6   :  { %1041 = vset.pattern.permute.xlu1 %v1068_v7  ;;  %v325_v7 = vmul.f32 %v1244_v50, %v268_v43 }
  0xa7   :  { %537 = vperm.xlu1 %1041, %v487_v16   ;;  %v154_v19 = vpop.permute.xlu1 %153  ;;  %v1289_v20 = vpop.permute.xlu0 %401  ;;  %v436_v16 = vmul.f32 %v1300_v29, %v378_v9  ;;  %v202_v9 = vmul.f32 %v1250_v53, %v1200_v22 }
  0xa8   :  { %v210_v21 = vmul.f32 %v1250_v53, %v154_v19  ;;  %v211_v24 = vmul.f32 %v1252_v54, %v154_v19 }
  0xaa   :  { %v234_v31 = vadd.f32 %v210_v21, %v120_v11  ;;  %v235_v32 = vadd.f32 %v211_v24, %v121_v15 }
  0xab   :  { %522 = vperm.xlu1 %1041, %v484_v25   ;;  %v158_v36 = vpop.permute.xlu1 %157  ;;  %v1306_v37 = vpop.permute.xlu0 %393 }
  0xac   :  { %v348_v39 = vadd.f32 %v324_v28, %v234_v31  ;;  %v349_v40 = vadd.f32 %v325_v7, %v235_v32  ;;  %v212_v21 = vmul.f32 %v1250_v53, %v158_v36  ;;  %v213_v24 = vmul.f32 %v1252_v54, %v158_v36 }
  0xae   :  { %v1313_v42 = vadd.f32 %v438_v33, %v348_v39  ;;  %v1315_v43 = vadd.f32 %v439_v35, %v349_v40  ;;  %v203_v33 = vmul.f32 %v1252_v54, %v1200_v22  ;;  %v204_v22 = vmul.f32 %v1250_v53, %v1208_v26 }
  0xaf   :  { %542 = vperm.xlu1 %1041, %v488_v38   ;;  %v1311_v41 = vpop.permute.xlu0 %405 }
  0xb0   :  { %v264_v44 = vpop.permute.xlu1 %263 }
  0xb1   :  { %v322_v19 = vmul.f32 %v1242_v49, %v264_v44  ;;  %v323_v11 = vmul.f32 %v1244_v50, %v264_v44 }
  0xb3   :  { %602 = vperm.xlu1 %1041, %v599_v45  }
  0xb4   :  { %v36_v46 = vpop.permute.xlu0 %35 }
  0xb5   :  { %v76_v56 = vpop.permute.xlu1 %75  ;;  %v112_v35 = vmul.f32 %v1238_v47, %v36_v46  ;;  %v113_v38 = vmul.f32 %v1240_v48, %v36_v46  ;;  %v205_v46 = vmul.f32 %v1252_v54, %v1208_v26  ;;  %v319_v26 = vmul.f32 %v1244_v50, %v1221_v34 }
  0xb6   :  { %v128_v59 = vmul.f32 %v1238_v47, %v76_v56  ;;  %v129_v60 = vmul.f32 %v1240_v48, %v76_v56 }
  0xb7   :  { %848 = vperm.xlu1 %1041, %v981_v55  }
  0xb8   :  { %v41_v57 = vpop.permute.xlu0 %40 }
  0xb9   :  { %v114_v55 = vmul.f32 %v1238_v47, %v41_v57  ;;  %v115_v56 = vmul.f32 %v1240_v48, %v41_v57 }
  0xba   :  { %v170_v58 = vpop.permute.xlu1 %169 }
  0xbb   :  { %v218_v61 = vmul.f32 %v1250_v53, %v170_v58  ;;  %v219_v63 = vmul.f32 %v1252_v54, %v170_v58 }
  0xbc   :  { %v51_v5 = vpop.permute.xlu0 %50 }
  0xbd   :  { %v1329_v10 = vadd.f32 %v218_v61, %v128_v59  ;;  %v1331_v12 = vadd.f32 %v219_v63, %v129_v60  ;;  %v118_v13 = vmul.f32 %v1238_v47, %v51_v5  ;;  %v119_v14 = vmul.f32 %v1240_v48, %v51_v5 }
  0xbe   :  { %v1337_v18 = vpop.permute.xlu1 %173  ;;  %v316_v60 = vmul.f32 %v1242_v49, %v1210_v27  ;;  %v317_v61 = vmul.f32 %v1244_v50, %v1210_v27  ;;  %v226_v63 = vadd.f32 %v202_v9, %v112_v35  ;;  %v228_v5 = vadd.f32 %v204_v22, %v114_v55 }
  0xbf   :  { %v232_v2 = vadd.f32 %v208_v0, %v118_v13  ;;  %v233_v15 = vadd.f32 %v209_v1, %v119_v14  ;;  %v227_v0 = vadd.f32 %v203_v33, %v113_v38  ;;  %v229_v13 = vadd.f32 %v205_v46, %v115_v56 }
  0xc0   :  { %v61_v25 = vpop.permute.xlu0 %60  ;;  %v431_v27 = vmul.f32 %v1302_v30, %v1275_v6 }
  0xc1   :  { %v122_v28 = vmul.f32 %v1238_v47, %v61_v25  ;;  %v123_v7 = vmul.f32 %v1240_v48, %v61_v25  ;;  %v346_v31 = vadd.f32 %v322_v19, %v232_v2  ;;  %v347_v32 = vadd.f32 %v323_v11, %v233_v15 }
  0xc2   :  { %v340_v19 = vadd.f32 %v316_v60, %v226_v63  ;;  %v341_v11 = vadd.f32 %v317_v61, %v227_v0  ;;  %v343_v15 = vadd.f32 %v319_v26, %v229_v13  ;;  %v433_v25 = vmul.f32 %v1302_v30, %v1277_v8 }
  0xc3   :  { %v236_v39 = vadd.f32 %v212_v21, %v122_v28  ;;  %v237_v40 = vadd.f32 %v213_v24, %v123_v7  ;;  %v272_v36 = vpop.permute.xlu1 %271  ;;  %v1351_v44 = vadd.f32 %v436_v16, %v346_v31  ;;  %v1353_v45 = vadd.f32 %v437_v17, %v347_v32 }
  0xc4   :  { %v326_v58 = vmul.f32 %v1242_v49, %v272_v36  ;;  %v327_v59 = vmul.f32 %v1244_v50, %v272_v36  ;;  %v318_v16 = vmul.f32 %v1242_v49, %v1221_v34  ;;  %v430_v17 = vmul.f32 %v1300_v29, %v1275_v6  ;;  %v81_v35 = vpop.permute.xlu0 %80 }
  0xc5   :  { %v432_v24 = vmul.f32 %v1300_v29, %v1277_v8  ;;  %v455_v7 = vadd.f32 %v431_v27, %v341_v11  ;;  %v457_v9 = vadd.f32 %v433_v25, %v343_v15  ;;  %v329_v26 = vmul.f32 %v1244_v50, %v1246_v51 }
  0xc6   :  { %v1367_v1 = vadd.f32 %v326_v58, %v236_v39  ;;  %v1369_v57 = vadd.f32 %v327_v59, %v237_v40  ;;  %v342_v2 = vadd.f32 %v318_v16, %v228_v5  ;;  %v454_v28 = vadd.f32 %v430_v17, %v340_v19 }
  0xc7   :  { %v216_v39 = vmul.f32 %v1250_v53, %v1202_v23  ;;  %v217_v40 = vmul.f32 %v1252_v54, %v1202_v23  ;;  %v328_v16 = vmul.f32 %v1242_v49, %v1246_v51  ;;  %v131_v25 = vmul.f32 %v1240_v48, %v81_v35 }
  0xc8   :  { %v1371_v14 = vpop.permute.xlu1 %373  ;;  %v456_v32 = vadd.f32 %v432_v24, %v342_v2  ;;  %v66_v61 = vpop.permute.xlu0 %65  ;;  %v130_v24 = vmul.f32 %v1238_v47, %v81_v35  ;;  %v221_v51 = vmul.f32 %v1252_v54, %v1337_v18 }
  0xc9   :  { %v124_v5 = vmul.f32 %v1238_v47, %v66_v61  ;;  %v125_v23 = vmul.f32 %v1240_v48, %v66_v61 }
  0xcd   :  { %v493_v21 = vpop.permute.xlu1 %492 }
  0xce   :  { %v550_v34 = vadd.f32 %v493_v21, %v454_v28  ;;  %v551_v31 = vadd.f32 %v493_v21, %v455_v7  ;;  %v220_v28 = vmul.f32 %v1250_v53, %v1337_v18  ;;  %v448_v7 = vmul.f32 %v1300_v29, %v1289_v20 }
  0xd0   :  { %v574_v36 = vmax.f32 %v550_v34, 0.0  ;;  %v575_v56 = vmax.f32 %v551_v31, 0.0  ;;  %v449_v34 = vmul.f32 %v1302_v30, %v1289_v20 }
  0xd1   :  { %v498_v33 = vpop.permute.xlu1 %497 }
  0xd2   :  { %v552_v6 = vadd.f32 %v498_v33, %v456_v32  ;;  %v553_v38 = vadd.f32 %v498_v33, %v457_v9  ;;  %v244_v32 = vadd.f32 %v220_v28, %v130_v24  ;;  %v245_v9 = vadd.f32 %v221_v51, %v131_v25 }
  0xd3   :  { %v445_v24 = vmul.f32 %v1302_v30, %v1306_v37 }
  0xd4   :  { %v576_v55 = vmax.f32 %v552_v6, 0.0  ;;  %v577_v8 = vmax.f32 %v553_v38, 0.0 }
  0xd5   :  { %v71_v58 = vpop.permute.xlu1 %70 }
  0xd6   :  { %v126_v59 = vmul.f32 %v1238_v47, %v71_v58  ;;  %v127_v22 = vmul.f32 %v1240_v48, %v71_v58  ;;  %v983_v46 = vpack.c.bf16 %v577_v8, %v575_v56  ;;  %v985_v60 = vpack.c.bf16 %v576_v55, %v574_v36 }
  0xd8   :  { %v240_v63 = vadd.f32 %v216_v39, %v126_v59  ;;  %v241_v0 = vadd.f32 %v217_v40, %v127_v22  ;;  %984 = vmatprep.subr.bf16.mxu0 %v983_v46  ;;  %v336_v59 = vmul.f32 %v1242_v49, %v1262_v62  ;;  %v337_v22 = vmul.f32 %v1244_v50, %v1262_v62 }
  0xd9   :  { %986 = vmatpush1.bf16.msra.mxu0 %v985_v60 }
  0xda   :  { %v162_v13 = vpop.permute.xlu1 %161 }
  0xdb   :  { %v214_v17 = vmul.f32 %v1250_v53, %v162_v13  ;;  %v215_v27 = vmul.f32 %v1252_v54, %v162_v13 }
  0xdd   :  { %v238_v19 = vadd.f32 %v214_v17, %v124_v5  ;;  %v239_v11 = vadd.f32 %v215_v27, %v125_v23  ;;  %v450_v5 = vmul.f32 %v1300_v29, %v1311_v41  ;;  %v451_v23 = vmul.f32 %v1302_v30, %v1311_v41 }
  0xdf   :  { %v1399_v2 = vpop.permute.xlu1 %283  ;;  %v1401_v15 = vadd.f32 %v328_v16, %v238_v19  ;;  %v1403_v21 = vadd.f32 %v329_v26, %v239_v11  ;;  %v444_v11 = vmul.f32 %v1300_v29, %v1306_v37 }
  0xe3   :  { %v288_v31 = vpop.permute.xlu1 %287 }
  0xe4   :  { %v334_v33 = vmul.f32 %v1242_v49, %v288_v31  ;;  %v335_v6 = vmul.f32 %v1244_v50, %v288_v31  ;;  %v435_v31 = vmul.f32 %v1302_v30, %v1371_v14 }
  0xe6   :  { %v358_v35 = vadd.f32 %v334_v33, %v244_v32  ;;  %v359_v38 = vadd.f32 %v335_v6, %v245_v9  ;;  %v459_v33 = vadd.f32 %v435_v31, %v1270_v4 }
  0xe8   :  { %v386_v39 = vpop.permute.xlu1 %385  ;;  %v1417_v40 = vadd.f32 %v448_v7, %v358_v35  ;;  %v1419_v36 = vadd.f32 %v449_v34, %v359_v38  ;;  %v434_v34 = vmul.f32 %v1300_v29, %v1371_v14 }
  0xea   :  { %v458_v9 = vadd.f32 %v434_v34, %v1268_v3  ;;  %v598_v3 = vld [vmem:[%s1531_s3] sm:$0x7] }
  0xed   :  { %v86_v18 = vpop.permute.xlu1 %85 }
  0xee   :  { %v132_v56 = vmul.f32 %v1238_v47, %v86_v18  ;;  %v133_v20 = vmul.f32 %v1240_v48, %v86_v18 }
  0xf2   :  { %v178_v55 = vpop.permute.xlu1 %177 }
  0xf3   :  { %v222_v8 = vmul.f32 %v1250_v53, %v178_v55  ;;  %v223_v58 = vmul.f32 %v1252_v54, %v178_v55 }
  0xf5   :  { %v246_v46 = vadd.f32 %v222_v8, %v132_v56  ;;  %v247_v60 = vadd.f32 %v223_v58, %v133_v20 }
  0xf6   :  { %v1429_v61 = vpop.permute.xlu1 %181 }
  0xf7   :  { %v360_v13 = vadd.f32 %v336_v59, %v246_v46  ;;  %v361_v16 = vadd.f32 %v337_v22, %v247_v60  ;;  %v91_v59 = vpop.permute.xlu0 %90  ;;  %v332_v22 = vmul.f32 %v1242_v49, %v1399_v2  ;;  %v333_v46 = vmul.f32 %v1244_v50, %v1399_v2 }
  0xf8   :  { %v225_v31 = vmul.f32 %v1252_v54, %v1429_v61 }
  0xf9   :  { %v1435_v26 = vadd.f32 %v450_v5, %v360_v13  ;;  %v1437_v17 = vadd.f32 %v451_v23, %v361_v16  ;;  %v357_v2 = vadd.f32 %v333_v46, %v1331_v12 }
  0xfb   :  { %v280_v27 = vpop.permute.xlu1 %279 }
  0xfc   :  { %v330_v19 = vmul.f32 %v1242_v49, %v280_v27  ;;  %v331_v62 = vmul.f32 %v1244_v50, %v280_v27  ;;  %v533_v27 = vpop.permute.xlu0 %532 }
  0xfe   :  { %v354_v25 = vadd.f32 %v330_v19, %v240_v63  ;;  %v355_v28 = vadd.f32 %v331_v62, %v241_v0 }
 0x100   :  { %v398_v41 = vpop.permute.xlu1 %397  ;;  %v1445_v51 = vadd.f32 %v444_v11, %v354_v25  ;;  %v1447_v7 = vadd.f32 %v445_v24, %v355_v28  ;;  %v356_v11 = vadd.f32 %v332_v22, %v1329_v10  ;;  %v528_v12 = vpop.permute.xlu0 %527 }
 0x101   :  { %v446_v13 = vmul.f32 %v1300_v29, %v398_v41 }
 0x103   :  { %v470_v28 = vadd.f32 %v446_v13, %v356_v11  ;;  %v977_v11 = vld [vmem:[%s1531_s3 + $0x4] sm:$0x7] }
 0x105   :  { %v503_v32 = vpop.permute.xlu1 %502 }
 0x106   :  { %v554_v6 = vadd.f32 %v503_v32, %v458_v9  ;;  %v555_v37 = vadd.f32 %v503_v32, %v459_v33 }
 0x108   :  { %v578_v38 = vmax.f32 %v554_v6, 0.0  ;;  %v579_v18 = vmax.f32 %v555_v37, 0.0 }
 0x109   :  { %v508_v63 = vpop.permute.xlu1 %507 }
 0x10a   :  { %v556_v0 = vadd.f32 %v508_v63, %v1351_v44  ;;  %v557_v35 = vadd.f32 %v508_v63, %v1353_v45  ;;  %v440_v44 = vmul.f32 %v1300_v29, %v386_v39  ;;  %v441_v45 = vmul.f32 %v1302_v30, %v386_v39 }
 0x10b   :  { %v447_v39 = vmul.f32 %v1302_v30, %v398_v41  ;;  %v224_v41 = vmul.f32 %v1250_v53, %v1429_v61 }
 0x10c   :  { %v580_v55 = vmax.f32 %v556_v0, 0.0  ;;  %v581_v56 = vmax.f32 %v557_v35, 0.0  ;;  %v464_v23 = vadd.f32 %v440_v44, %v1367_v1  ;;  %v134_v1 = vmul.f32 %v1238_v47, %v91_v59 }
 0x10d   :  { %v471_v34 = vadd.f32 %v447_v39, %v357_v2  ;;  %v566_v47 = vadd.f32 %v533_v27, %v470_v28  ;;  %v564_v35 = vadd.f32 %v528_v12, %v1445_v51 }
 0x10e   :  { %v296_v20 = vpop.permute.xlu1 %295  ;;  %v987_v8 = vpack.c.bf16 %v581_v56, %v579_v18  ;;  %v989_v58 = vpack.c.bf16 %v580_v55, %v578_v38  ;;  %v248_v53 = vadd.f32 %v224_v41, %v134_v1 }
 0x10f   :  { %v338_v33 = vmul.f32 %v1242_v49, %v296_v20  ;;  %v339_v6 = vmul.f32 %v1244_v50, %v296_v20  ;;  %v567_v37 = vadd.f32 %v533_v27, %v471_v34  ;;  %v565_v49 = vadd.f32 %v528_v12, %v1447_v7 }
 0x110   :  { %988 = vmatprep.subr.bf16.mxu0 %v987_v8  ;;  %v590_v20 = vmax.f32 %v566_v47, 0.0  ;;  %v588_v22 = vmax.f32 %v564_v35, 0.0 }
 0x111   :  { %990 = vmatpush1.bf16.msra.mxu0 %v989_v58  ;;  %v362_v50 = vadd.f32 %v338_v33, %v248_v53  ;;  %v589_v46 = vmax.f32 %v565_v49, 0.0 }
 0x113   :  { %v390_v4 = vpop.permute.xlu1 %389 }
 0x114   :  { %976 = vmatmul.mubr.msk.f32.vlgmr.msra.gmra.mrb[0].mxu0 %vm605_vm0, %v598_v3  ;;  %v443_v63 = vmul.f32 %v1302_v30, %v390_v4  ;;  %v591_v3 = vmax.f32 %v567_v37, 0.0 }
 0x115   :  { %918 = vmatprep.mubr.f32.mxu0 %v1070_v52  ;;  %v465_v52 = vadd.f32 %v441_v45, %v1369_v57  ;;  %v135_v57 = vmul.f32 %v1240_v48, %v91_v59  ;;  %v442_v48 = vmul.f32 %v1300_v29, %v390_v4 }
 0x116   :  { %v467_v58 = vadd.f32 %v443_v63, %v1403_v21 }
 0x117   :  { %v249_v0 = vadd.f32 %v225_v31, %v135_v57  ;;  %v466_v8 = vadd.f32 %v442_v48, %v1401_v15 }
 0x118   :  { %v513_v14 = vpop.permute.xlu1 %512 }
 0x119   :  { %v558_v60 = vadd.f32 %v513_v14, %v1313_v42  ;;  %v559_v5 = vadd.f32 %v513_v14, %v1315_v43  ;;  %v363_v18 = vadd.f32 %v339_v6, %v249_v0 }
 0x11b   :  { %v582_v24 = vmax.f32 %v558_v60, 0.0  ;;  %v583_v25 = vmax.f32 %v559_v5, 0.0 }
 0x11c   :  { %v518_v16 = vpop.permute.xlu1 %517 }
 0x11d   :  { %v560_v19 = vadd.f32 %v518_v16, %v464_v23  ;;  %v561_v62 = vadd.f32 %v518_v16, %v465_v52 }
 0x11f   :  { %v584_v42 = vmax.f32 %v560_v19, 0.0  ;;  %v585_v43 = vmax.f32 %v561_v62, 0.0 }
 0x121   :  { %v410_v32 = vpop.permute.xlu1 %409  ;;  %v991_v10 = vpack.c.bf16 %v585_v43, %v583_v25  ;;  %v993_v9 = vpack.c.bf16 %v584_v42, %v582_v24 }
 0x122   :  { %v452_v54 = vmul.f32 %v1300_v29, %v410_v32  ;;  %v453_v61 = vmul.f32 %v1302_v30, %v410_v32 }
 0x123   :  { %992 = vmatprep.subr.bf16.mxu1 %v991_v10 }
 0x124   :  { %994 = vmatpush1.bf16.msra.mxu1 %v993_v9  ;;  %v476_v29 = vadd.f32 %v452_v54, %v362_v50  ;;  %v477_v4 = vadd.f32 %v453_v61, %v363_v18 }
 0x126   :  { %v538_v38 = vpop.permute.xlu1 %537 }
 0x127   :  { %v568_v55 = vadd.f32 %v538_v38, %v1417_v40  ;;  %v569_v56 = vadd.f32 %v538_v38, %v1419_v36  ;;  %v548_v40 = vpop.permute.xlu0 %547 }
 0x128   :  { %v572_v60 = vadd.f32 %v548_v40, %v476_v29  ;;  %v573_v36 = vadd.f32 %v548_v40, %v477_v4 }
 0x129   :  { %v592_v30 = vmax.f32 %v568_v55, 0.0  ;;  %v593_v44 = vmax.f32 %v569_v56, 0.0 }
 0x12a   :  { %v523_v51 = vpop.permute.xlu1 %522  ;;  %v596_v19 = vmax.f32 %v572_v60, 0.0  ;;  %v597_v62 = vmax.f32 %v573_v36, 0.0 }
 0x12b   :  { %v1001_v45 = vpack.c.bf16 %v592_v30, %v590_v20  ;;  %v562_v7 = vadd.f32 %v523_v51, %v466_v8  ;;  %v563_v14 = vadd.f32 %v523_v51, %v467_v58  ;;  %v999_v59 = vpack.c.bf16 %v593_v44, %v591_v3  ;;  %v726_v61 = vpop.permute.xlu0 %725 }
 0x12d   :  { %v586_v5 = vmax.f32 %v562_v7, 0.0  ;;  %v587_v23 = vmax.f32 %v563_v14, 0.0  ;;  %1000 = vmatprep.subr.bf16.mxu0 %v999_v59 }
 0x12e   :  { %v543_v15 = vpop.permute.xlu1 %542  ;;  %1002 = vmatpush1.bf16.msra.mxu0 %v1001_v45 }
 0x12f   :  { %v570_v21 = vadd.f32 %v543_v15, %v1435_v26  ;;  %v571_v52 = vadd.f32 %v543_v15, %v1437_v17  ;;  %v995_v13 = vpack.c.bf16 %v589_v46, %v587_v23  ;;  %v997_v39 = vpack.c.bf16 %v588_v22, %v586_v5  ;;  %v980_v26 = vld [vmem:[%s1531_s3 + $0x8] sm:$0x7] }
 0x131   :  { %v594_v16 = vmax.f32 %v570_v21, 0.0  ;;  %v595_v27 = vmax.f32 %v571_v52, 0.0  ;;  %996 = vmatprep.subr.bf16.mxu1 %v995_v13 }
 0x132   :  { %998 = vmatpush1.bf16.msra.mxu1 %v997_v39  ;;  %v603_v17 = vpop.permute.xlu1 %602 }
 0x133   :  { %v1005_v2 = vpack.c.bf16 %v596_v19, %v594_v16  ;;  %v1003_v24 = vpack.c.bf16 %v597_v62, %v595_v27 }
 0x135   :  { %979 = vmatmul.mubr.msk.f32.vlgmr.msra.gmra.mrb[0].mxu1 %vm605_vm0, %v977_v11  ;;  %1004 = vmatprep.subr.bf16.mxu0 %v1003_v24 }
 0x136   :  { %1006 = vmatpush1.bf16.msra.mxu0 %v1005_v2  ;;  %v849_v55 = vpop.permute.xlu1 %848 }
 0x139   :  { %982 = vmatmul.mubr.msk.f32.vlgmr.msra.gmra.mrb[2].mxu0 %vm605_vm0, %v980_v26 }
 0x1e7   :  { %v675_v42 = vpop.f32.mrb[0].mxu0 }
 0x1e8   :  { %v676_v25 = vadd.f32 %v675_v42, %v603_v17  ;;  %v677_v43 = vpop.f32.mrb[1].mxu0 }
 0x1e9   :  { %v678_v1 = vadd.f32 %v677_v43, %v603_v17 }
 0x1ea   :  { %v681_v57 = vsel %vm680_vm1, %v676_v25, -inf }
 0x1eb   :  { %v682_v28 = vrot.slane %v681_v57, 4  ;;  %v688_v34 = vsel %vm680_vm1, %v678_v1, -inf }
 0x1ec   :  { %v689_v41 = vrot.slane %v688_v34, 4 }
 0x1ed   :  { %v683_v31 = vmax.f32 %v681_v57, %v682_v28 }
 0x1ee   :  { %v690_v32 = vmax.f32 %v688_v34, %v689_v41 }
 0x1ef   :  { %v684_v10 = vrot.slane %v683_v31, 2 }
 0x1f0   :  { %v691_v9 = vrot.slane %v690_v32, 2 }
 0x1f1   :  { %v685_v12 = vmax.f32 %v683_v31, %v684_v10 }
 0x1f2   :  { %v692_v33 = vmax.f32 %v690_v32, %v691_v9 }
 0x1f3   :  { %v686_v6 = vrot.slane %v685_v12, 1 }
 0x1f4   :  { %v693_v47 = vrot.slane %v692_v33, 1 }
 0x1f5   :  { %v687_v37 = vmax.f32 %v685_v12, %v686_v6 }
 0x1f6   :  { %v694_v48 = vmax.f32 %v692_v33, %v693_v47 }
 0x1f7   :  { %v695_v63 = vsub.f32 %v676_v25, %v687_v37 }
 0x1f8   :  { %v696_v53 = vsub.f32 %v678_v1, %v694_v48 }
 0x1f9   :  { %v697_v0 = vmul.f32 1.442695, %v695_v63 }
 0x1fa   :  { %v699_v54 = vmul.f32 1.442695, %v696_v53 }
 0x1fb   :  { %1042 = vpow2.f32 %v697_v0 }
 0x1fc   :  { %1044 = vpow2.f32 %v699_v54 }
 0x205   :  { %v1510_v5 = vpop.eup %1042 }
 0x206   :  { %v1512_v21 = vpop.eup %1044  ;;  %v701_v27 = vsel %vm680_vm1, %v1510_v5, 0.0 }
 0x207   :  { %v708_v11 = vsel %vm680_vm1, %v1512_v21, 0.0  ;;  %v702_v42 = vrot.slane %v701_v27, 4 }
 0x208   :  { %v797_v35 = vpop.f32.mrb[0].mxu1  ;;  %v709_v1 = vrot.slane %v708_v11, 4 }
 0x209   :  { %v798_v49 = vadd.f32 %v797_v35, %v726_v61  ;;  %v799_v38 = vpop.f32.mrb[1].mxu1  ;;  %v703_v31 = vadd.f32 %v702_v42, %v701_v27 }
 0x20a   :  { %v800_v50 = vadd.f32 %v799_v38, %v726_v61  ;;  %v710_v10 = vadd.f32 %v709_v1, %v708_v11 }
 0x20b   :  { %v802_v18 = vsel %vm680_vm1, %v798_v49, -inf  ;;  %v704_v12 = vrot.slane %v703_v31, 2 }
 0x20c   :  { %v803_v56 = vrot.slane %v802_v18, 4  ;;  %v809_v20 = vsel %vm680_vm1, %v800_v50, -inf  ;;  %v920_v8 = vpop.f32.mrb[2].mxu0  ;;  %v711_v33 = vrot.slane %v710_v10, 2 }
 0x20d   :  { %v810_v58 = vrot.slane %v809_v20, 4  ;;  %v921_v3 = vadd.f32 %v920_v8, %v849_v55  ;;  %v922_v29 = vpop.f32.mrb[3].mxu0  ;;  %v705_v47 = vadd.f32 %v704_v12, %v703_v31 }
 0x20e   :  { %v804_v4 = vmax.f32 %v802_v18, %v803_v56  ;;  %v923_v30 = vadd.f32 %v922_v29, %v849_v55  ;;  %v712_v48 = vadd.f32 %v711_v33, %v710_v10 }
 0x20f   :  { %v811_v44 = vmax.f32 %v809_v20, %v810_v58  ;;  %v925_v51 = vsel %vm680_vm1, %v921_v3, -inf  ;;  %v706_v35 = vrot.slane %v705_v47, 1 }
 0x210   :  { %v805_v45 = vrot.slane %v804_v4, 2  ;;  %v926_v7 = vrot.slane %v925_v51, 4  ;;  %v932_v14 = vsel %vm680_vm1, %v923_v30, -inf }
 0x211   :  { %v812_v59 = vrot.slane %v811_v44, 2  ;;  %v933_v22 = vrot.slane %v932_v14, 4  ;;  %v707_v29 = vadd.f32 %v706_v35, %v705_v47 }
 0x212   :  { %v806_v46 = vmax.f32 %v804_v4, %v805_v45  ;;  %v927_v40 = vmax.f32 %v925_v51, %v926_v7 }
 0x213   :  { %v813_v60 = vmax.f32 %v811_v44, %v812_v59  ;;  %v934_v36 = vmax.f32 %v932_v14, %v933_v22 }
 0x214   :  { %v807_v23 = vrot.slane %v806_v46, 1  ;;  %v928_v15 = vrot.slane %v927_v40, 2 }
 0x215   :  { %v814_v52 = vrot.slane %v813_v60, 1  ;;  %v935_v13 = vrot.slane %v934_v36, 2 }
 0x216   :  { %v808_v39 = vmax.f32 %v806_v46, %v807_v23  ;;  %v929_v16 = vmax.f32 %v927_v40, %v928_v15 }
 0x217   :  { %v815_v19 = vmax.f32 %v813_v60, %v814_v52  ;;  %v936_v62 = vmax.f32 %v934_v36, %v935_v13 }
 0x218   :  { %v816_v2 = vsub.f32 %v798_v49, %v808_v39  ;;  %v930_v24 = vrot.slane %v929_v16, 1 }
 0x219   :  { %v817_v26 = vsub.f32 %v800_v50, %v815_v19  ;;  %v937_v17 = vrot.slane %v936_v62, 1  ;;  %v713_v50 = vrot.slane %v712_v48, 1 }
 0x21a   :  { %v818_v25 = vmul.f32 1.442695, %v816_v2  ;;  %v931_v43 = vmax.f32 %v929_v16, %v930_v24 }
 0x21b   :  { %v820_v57 = vmul.f32 1.442695, %v817_v26  ;;  %v938_v28 = vmax.f32 %v936_v62, %v937_v17  ;;  %v714_v44 = vadd.f32 %v713_v50, %v712_v48 }
 0x21c   :  { %1046 = vpow2.f32 %v818_v25  ;;  %v939_v34 = vsub.f32 %v921_v3, %v931_v43 }
 0x21d   :  { %1048 = vpow2.f32 %v820_v57  ;;  %v940_v41 = vsub.f32 %v923_v30, %v938_v28 }
 0x21e   :  { %v941_v32 = vmul.f32 1.442695, %v939_v34 }
 0x21f   :  { %v943_v9 = vmul.f32 1.442695, %v940_v41 }
 0x220   :  { %1050 = vpow2.f32 %v941_v32 }
 0x221   :  { %1052 = vpow2.f32 %v943_v9 }
 0x222   :  { %1054 = vrcp.f32 %v707_v29 }
 0x223   :  { %1056 = vrcp.f32 %v714_v44 }
 0x226   :  { %v1047_v6 = vpop.eup %1046 }
 0x227   :  { %v1049_v37 = vpop.eup %1048  ;;  %v822_v63 = vsel %vm680_vm1, %v1047_v6, 0.0 }
 0x228   :  { %v823_v53 = vrot.slane %v822_v63, 4  ;;  %v829_v0 = vsel %vm680_vm1, %v1049_v37, 0.0 }
 0x229   :  { %v830_v54 = vrot.slane %v829_v0, 4 }
 0x22a   :  { %v1051_v61 = vpop.eup %1050  ;;  %v824_v49 = vadd.f32 %v823_v53, %v822_v63 }
 0x22b   :  { %v1053_v38 = vpop.eup %1052  ;;  %v831_v18 = vadd.f32 %v830_v54, %v829_v0  ;;  %v945_v55 = vsel %vm680_vm1, %v1051_v61, 0.0 }
 0x22c   :  { %v825_v56 = vrot.slane %v824_v49, 2  ;;  %v946_v20 = vrot.slane %v945_v55, 4  ;;  %v952_v8 = vsel %vm680_vm1, %v1053_v38, 0.0  ;;  %v1055_v39 = vpop.eup %1054 }
 0x22d   :  { %v832_v58 = vrot.slane %v831_v18, 2  ;;  %v953_v3 = vrot.slane %v952_v8, 4  ;;  %v1057_v16 = vpop.eup %1056  ;;  %v717_v62 = vmul.f32 %v1055_v39, %v1510_v5 }
 0x22e   :  { %v826_v4 = vadd.f32 %v825_v56, %v824_v49  ;;  %v947_v30 = vadd.f32 %v946_v20, %v945_v55  ;;  %v718_v2 = vmul.f32 %v1057_v16, %v1512_v21 }
 0x22f   :  { %v833_v51 = vadd.f32 %v832_v58, %v831_v18  ;;  %v954_v45 = vadd.f32 %v953_v3, %v952_v8 }
 0x230   :  { %v827_v7 = vrot.slane %v826_v4, 1  ;;  %v948_v14 = vrot.slane %v947_v30, 2 }
 0x231   :  { %v834_v59 = vrot.slane %v833_v51, 1  ;;  %v955_v22 = vrot.slane %v954_v45, 2 }
 0x232   :  { %v828_v46 = vadd.f32 %v827_v7, %v826_v4  ;;  %v949_v40 = vadd.f32 %v948_v14, %v947_v30 }
 0x233   :  { %v835_v60 = vadd.f32 %v834_v59, %v833_v51  ;;  %v956_v36 = vadd.f32 %v955_v22, %v954_v45 }
 0x234   :  { %1058 = vrcp.f32 %v828_v46  ;;  %v950_v23 = vrot.slane %v949_v40, 1 }
 0x235   :  { %1060 = vrcp.f32 %v835_v60  ;;  %v957_v15 = vrot.slane %v956_v36, 1 }
 0x236   :  { %v951_v52 = vadd.f32 %v950_v23, %v949_v40 }
 0x237   :  { %v958_v13 = vadd.f32 %v957_v15, %v956_v36 }
 0x238   :  { %1062 = vrcp.f32 %v951_v52 }
 0x239   :  { %1064 = vrcp.f32 %v958_v13 }
 0x23e   :  { %v1059_v27 = vpop.eup %1058 }
 0x23f   :  { %v1061_v19 = vpop.eup %1060  ;;  %v838_v11 = vmul.f32 %v1059_v27, %v1047_v6 }
 0x240   :  { %v839_v24 = vmul.f32 %v1061_v19, %v1049_v37 }
 0x241   :  { %v840_v26 = vadd.f32 %v838_v11, %v717_v62 }
 0x242   :  { %v1063_v17 = vpop.eup %1062  ;;  %v841_v42 = vadd.f32 %v839_v24, %v718_v2 }
 0x243   :  { %v1065_v25 = vpop.eup %1064  ;;  %v961_v43 = vmul.f32 %v1063_v17, %v1051_v61 }
 0x244   :  { %v962_v1 = vmul.f32 %v1065_v25, %v1053_v38 }
 0x245   :  { %v963_v57 = vadd.f32 %v961_v43, %v840_v26 }
 0x246   :  { %v964_v28 = vadd.f32 %v962_v1, %v841_v42 }
 0x247   :  { %v965_v34 = vmul.f32 0.33333334, %v963_v57 }
 0x248   :  { %v966_v41 = vmul.f32 0.33333334, %v964_v28 }
 0x24a   :  { %v969_v31 = vcombine.low %v965_v34, %v966_v41 }
 0x24c   :  { %971 = vst [vmem:[%s1532_s5] sm:$0x77] %v969_v31 }

</bundles_post_ra>
